<compile_context>
chip_gen: v5e
topology: v5e:2x2
jax: 0.10.0
libtpu: 0.0.40
codegen_flags: <defaults>
</compile_context>

<pallas_src>
import functools

import jax
import jax.numpy as jnp
from jax import lax
from jax.experimental import pallas as pl
from jax.experimental.pallas import tpu as pltpu


def _round_up(x, m):
    return (x + m - 1) // m * m


# ----------------------------------------------------------------------------
# Fused kernel: conv1(1x1)+ReLU -> conv2(3x3, stride 2)+ReLU, one batch block
# of images per grid step.
# ----------------------------------------------------------------------------
def _extra_block_kernel(xs_ref, w1_ref, w2_ref, b2_ref, o_ref, h_ref, *,
                        bsz, hb, scw, ho, wo_p, pad, k_mid):
    # conv1 (1x1) + bias (folded via the "ones" channel) + ReLU: one bf16 MXU
    # matmul over the whole batch block, f32 accumulation.
    x = xs_ref[...].reshape(bsz * hb * scw, -1)
    h = jnp.dot(x, w1_ref[...], preferred_element_type=jnp.float32)
    h = jnp.maximum(h, 0.0).astype(jnp.bfloat16)            # bf16 intermediate

    if pad:
        # conv2's top zero-padding block-row.  Re-zeroed every step (tiny and
        # megacore-safe); the interior below is fully rewritten each step.
        h_ref[:, 0:1, :, :] = jnp.zeros((bsz, 1, scw, k_mid), jnp.bfloat16)
    # Full-width, (8,128)-aligned store (no stored column halo: the left zero
    # column is synthesised at read time).
    h_ref[:, pad:pad + hb, :, :] = h.reshape(bsz, hb, scw, k_mid)

    # conv2 (3x3, stride 2) == ONE fused matmul over the 4 neighbour offsets
    # of the space-to-depth intermediate (K = 4 * k_mid).
    taps = []
    for ai in (0, 1):
        u = h_ref[:, ai:ai + ho, 0:wo_p, :]                 # aligned centre slab
        if pad:
            # Left tap = centre slab shifted right by one block column with a
            # zero fill (conv2's left zero padding); reuses the same load.
            zero_col = jnp.zeros((bsz, ho, 1, k_mid), jnp.bfloat16)
            left = jnp.concatenate([zero_col, u[:, :, :wo_p - 1, :]], axis=2)
            taps += [left, u]
        else:
            taps += [u, h_ref[:, ai:ai + ho, 1:1 + wo_p, :]]
    lhs = jnp.concatenate(taps, axis=-1).reshape(bsz * ho * wo_p, 4 * k_mid)
    acc = jnp.dot(lhs, w2_ref[...], preferred_element_type=jnp.float32)
    acc = jnp.maximum(acc + b2_ref[...], 0.0)               # bias + ReLU in f32
    o_ref[...] = acc.reshape(bsz, ho, wo_p, -1).astype(o_ref.dtype)


# ----------------------------------------------------------------------------
# One-time weight packing (hoisted out of the forward path).
# ----------------------------------------------------------------------------
def pack_extra_block_params(params, last_ext=False):
    """Pack ExtraBlock weights for the fused kernel.  Call ONCE at load time."""
    w1, b1 = params["w1"], params["b1"]          # (C1, Cin, 1, 1), (C1,)
    w2, b2 = params["w2"], params["b2"]          # (Co, C1, 3, 3),  (Co,)
    out1_ch, in_ch = int(w1.shape[0]), int(w1.shape[1])
    cout = int(w2.shape[0])
    pad = 0 if last_ext else 1
    cin_p = _round_up(in_ch + 1, 32)             # +1 = "ones" bias channel
    c1_p = _round_up(out1_ch, 32)
    k_mid = 4 * c1_p

    # conv1 weight, bias folded in via the ones channel, replicated
    # block-diagonally over the 4 space-to-depth phase groups.
    # NOTE: b1 is applied at bf16 precision (rounded once); the zeroed ones
    # channel of padded pixels makes conv2's zero padding exact.
    w1_aug = jnp.zeros((cin_p, c1_p), jnp.float32)
    w1_aug = w1_aug.at[:in_ch, :out1_ch].set(jnp.transpose(w1[:, :, 0, 0]))
    w1_aug = w1_aug.at[in_ch, :out1_ch].set(b1.astype(jnp.float32))
    w1_bd = jnp.zeros((4 * cin_p, 4 * c1_p), jnp.float32)
    for g in range(4):
        w1_bd = w1_bd.at[g * cin_p:(g + 1) * cin_p,
                         g * c1_p:(g + 1) * c1_p].set(w1_aug)

    # conv2 taps regrouped into ONE fused (4*k_mid, cout) matrix.
    # K layout: [tap t = 2*(di+pad)+(dj+pad)] x [phase g = 2p+q] x [c1_p].
    w2f = jnp.zeros((4 * k_mid, cout), jnp.float32)
    for kh in range(3):
        di, p = (kh - pad) // 2, (kh - pad) % 2
        for kw in range(3):
            dj, q = (kw - pad) // 2, (kw - pad) % 2
            t = 2 * (di + pad) + (dj + pad)
            base = t * k_mid + (2 * p + q) * c1_p
            w2f = w2f.at[base:base + out1_ch, :].set(
                jnp.transpose(w2[:, :, kh, kw]).astype(jnp.float32))

    return {"w1": w1_bd.astype(jnp.bfloat16),
            "w2": w2f.astype(jnp.bfloat16),
            "b2": b2.reshape(1, cout).astype(jnp.float32)}


# ----------------------------------------------------------------------------
# Input preparation (XLA glue) and batch-block selection
# ----------------------------------------------------------------------------
def _prep_input(x_nchw, cin_p, scw, n_pad):
    """NCHW -> space-to-depth rows (n_pad, hb*scw, 4*cin_p), bf16."""
    n, in_ch, H, W = x_nchw.shape
    hb = (H + 1) // 2
    # TODO(synk): if the surrounding graph can stay NHWC end-to-end, this
    # transpose (and the final NHWC->NCHW one) are pure layout glue to honour
    # the PyTorch NCHW contract and can be dropped.
    x = jnp.transpose(x_nchw, (0, 2, 3, 1))                  # NHWC
    ones = jnp.ones((n, H, W, 1), x.dtype)                   # bias/valid chan
    x = jnp.concatenate([x, ones], axis=-1)
    x = jnp.pad(x, ((0, n_pad - n), (0, 2 * hb - H),
                    (0, 2 * scw - W), (0, cin_p - in_ch - 1)))
    x = x.reshape(n_pad, hb, 2, scw, 2, cin_p).transpose(0, 1, 3, 2, 4, 5)
    return x.reshape(n_pad, hb * scw, 4 * cin_p).astype(jnp.bfloat16)


def _pick_batch_block(n, m1, m2, k_in, k_mid, cout, srows, scw):
    """Batch block so matmul M approaches the MXU height, while keeping >= 2
    grid steps when possible (v7x: 2 TensorCores) and a safe VMEM budget."""
    bsz = max(1, -(-256 // max(m1, 1)))
    if n >= 2:
        bsz = min(bsz, -(-n // 2))
    bsz = max(1, min(bsz, n))

    def vmem_bytes(b):
        return (2 * b * m1 * k_in * 2            # xs blocks (x2 pipeline), bf16
                + 2 * b * m2 * cout * 4          # out blocks (x2 pipeline), f32
                + 2 * (k_in * k_mid + 4 * k_mid * cout) * 2 + 2 * cout * 4
                + b * srows * scw * k_mid * 2)   # bf16 intermediate scratch

    while bsz > 1 and vmem_bytes(bsz) > 24 * 1024 * 1024:    # v7x-safe budget
        bsz -= 1
    return bsz, vmem_bytes(bsz)


# ----------------------------------------------------------------------------
# ExtraBlock forward
# ----------------------------------------------------------------------------
def extra_block_forward(x_nchw, packed, last_ext=False):
    """x_nchw: (N, in_ch, H, W) f32; packed = pack_extra_block_params(...).
    Returns (N, 256, Ho, Wo) f32 NCHW, matching the PyTorch module."""
    n, in_ch, H, W = x_nchw.shape
    w1_bd, w2f, b2r = packed["w1"], packed["w2"], packed["b2"]
    k_in, k_mid = w1_bd.shape
    cout = b2r.shape[1]
    cin_p = k_in // 4
    pad = 0 if last_ext else 1
    ho = (H + 2 * pad - 3) // 2 + 1
    wo = (W + 2 * pad - 3) // 2 + 1
    hb, wb = (H + 1) // 2, (W + 1) // 2
    wo_p = _round_up(wo, 8)                       # sublane-dense output M
    scw = _round_up(max(wb, wo_p if pad else wo_p + 1), 8)

    bsz, vmem_need = _pick_batch_block(n, hb * scw, ho * wo_p, k_in, k_mid,
                                       cout, hb + pad, scw)
    n_pad = _round_up(n, bsz)
    xs = _prep_input(x_nchw, cin_p, scw, n_pad)   # (n_pad, hb*scw, k_in) bf16

    kernel = functools.partial(_extra_block_kernel, bsz=bsz, hb=hb, scw=scw,
                               ho=ho, wo_p=wo_p, pad=pad, k_mid=k_mid)
    flops = 2 * n_pad * (hb * scw * k_in * k_mid + ho * wo_p * 4 * k_mid * cout)
    bytes_accessed = (xs.size * 2 + w1_bd.size * 2 + w2f.size * 2
                      + b2r.size * 4 + n_pad * ho * wo_p * cout * 4)

    out = pl.pallas_call(
        kernel,
        out_shape=jax.ShapeDtypeStruct((n_pad, ho, wo_p, cout), jnp.float32),
        grid=(n_pad // bsz,),
        in_specs=[
            pl.BlockSpec((bsz, hb * scw, k_in), lambda i: (i, 0, 0)),   # x (s2d)
            # Weight / bias blocks are grid-invariant (stay resident in VMEM).
            # TODO(synk): pipeline_mode=pl.Buffered(1) would drop their second
            # pipeline buffer; skipped to stay on the well-trodden path.
            pl.BlockSpec((k_in, k_mid), lambda i: (0, 0)),              # w1
            pl.BlockSpec((4 * k_mid, cout), lambda i: (0, 0)),          # w2
            pl.BlockSpec((1, cout), lambda i: (0, 0)),                  # b2
        ],
        out_specs=pl.BlockSpec((bsz, ho, wo_p, cout), lambda i: (i, 0, 0, 0)),
        scratch_shapes=[
            pltpu.VMEM((bsz, hb + pad, scw, k_mid), jnp.bfloat16),      # conv1 out
        ],
        compiler_params=pltpu.CompilerParams(
            dimension_semantics=("parallel",),
            vmem_limit_bytes=int(min(64 * 1024 * 1024,
                                     max(32 * 1024 * 1024, 2 * vmem_need)))),
        cost_estimate=pl.CostEstimate(flops=flops, transcendentals=0,
                                      bytes_accessed=bytes_accessed),
    )(xs, w1_bd, w2f, b2r)

    out = out[:n, :, :wo, :]
    return jnp.transpose(out, (0, 3, 1, 2))       # back to NCHW


# ----------------------------------------------------------------------------
# Pure-JAX reference (correctness check)
# ----------------------------------------------------------------------------
def extra_block_reference(x_nchw, params, last_ext=False):
    w1, b1, w2, b2 = params["w1"], params["b1"], params["w2"], params["b2"]
    out = lax.conv_general_dilated(
        x_nchw, w1, window_strides=(1, 1), padding="VALID",
        dimension_numbers=("NCHW", "OIHW", "NCHW"))
    out = jax.nn.relu(out + b1.reshape(1, -1, 1, 1))
    pad = 0 if last_ext else 1
    out = lax.conv_general_dilated(
        out, w2, window_strides=(2, 2), padding=((pad, pad), (pad, pad)),
        dimension_numbers=("NCHW", "OIHW", "NCHW"))
    return jax.nn.relu(out + b2.reshape(1, -1, 1, 1))


def init_params(key, in_ch, out1_ch):
    k1, k2, k3, k4 = jax.random.split(key, 4)
    return {
        "w1": jax.random.normal(k1, (out1_ch, in_ch, 1, 1), jnp.float32) * 0.1,
        "b1": jax.random.normal(k2, (out1_ch,), jnp.float32) * 0.1,
        "w2": jax.random.normal(k3, (256, out1_ch, 3, 3), jnp.float32) * 0.05,
        "b2": jax.random.normal(k4, (256,), jnp.float32) * 0.1,
    }


if __name__ == "__main__":
    key = jax.random.PRNGKey(0)
    kx, kp = jax.random.split(key)

    N, in_ch, H, W = 2, 4, 16, 16
    out1_ch = 8
    x = jax.random.normal(kx, (N, in_ch, H, W), jnp.float32)
    params = init_params(kp, in_ch, out1_ch)

    for last_ext in (False, True):
        packed = pack_extra_block_params(params, last_ext=last_ext)  # once
        fwd = jax.jit(functools.partial(extra_block_forward, last_ext=last_ext))
        out = jax.block_until_ready(fwd(x, packed))
        ref = extra_block_reference(x, params, last_ext=last_ext)
        assert out.shape == ref.shape, (out.shape, ref.shape)
        err = float(jnp.max(jnp.abs(out - ref)))
        assert err < 5e-2, err   # bf16 MXU operands, f32 accumulation
    print("KERNEL_OK")
</pallas_src>

<mosaic_0001>
module attributes {stable_mosaic.version = 11 : i64} {
  func.func @_extra_block_kernel(%arg0: i32, %arg1: memref<1x64x128xbf16, #tpu.memory_space<vmem>>, %arg2: memref<128x128xbf16, #tpu.memory_space<vmem>>, %arg3: memref<512x256xbf16, #tpu.memory_space<vmem>>, %arg4: memref<1x256xf32, #tpu.memory_space<vmem>>, %arg5: memref<1x8x8x256xf32, #tpu.memory_space<vmem>>, %arg6: memref<1x9x8x128xbf16, #tpu.memory_space<vmem>>) attributes {dimension_semantics = [#tpu.dimension_semantics<parallel>], iteration_bounds = array<i64: 2>, scalar_prefetch = 0 : i64, scratch_operands = 1 : i64, tpu.core_type = #tpu.core_type<tc>, window_params = [{transform_indices = @transform_0, window_bounds = array<i64: 1, 64, 128>}, {pipeline_mode = #tpu.pipeline_mode<synchronous>, transform_indices = @transform_1, window_bounds = array<i64: 128, 128>}, {pipeline_mode = #tpu.pipeline_mode<synchronous>, transform_indices = @transform_2, window_bounds = array<i64: 512, 256>}, {pipeline_mode = #tpu.pipeline_mode<synchronous>, transform_indices = @transform_3, window_bounds = array<i64: 1, 256>}, {transform_indices = @transform_4, window_bounds = array<i64: 1, 8, 8, 256>}]} {
    %c0 = arith.constant 0 : index
    %c0_0 = arith.constant 0 : index
    %c0_1 = arith.constant 0 : index
    %0 = vector.load %arg1[%c0, %c0_0, %c0_1] : memref<1x64x128xbf16, #tpu.memory_space<vmem>>, vector<1x64x128xbf16>
    %1 = vector.shape_cast %0 : vector<1x64x128xbf16> to vector<64x128xbf16>
    %c0_2 = arith.constant 0 : index
    %c0_3 = arith.constant 0 : index
    %2 = vector.load %arg2[%c0_2, %c0_3] : memref<128x128xbf16, #tpu.memory_space<vmem>>, vector<128x128xbf16>
    %cst = arith.constant dense<0.000000e+00> : vector<64x128xf32>
    %3 = tpu.matmul %1, %2, %cst {dimension_numbers = #tpu.dot_dimension_numbers<[1], [0], [0], [1], [0, 0, 1, 1], [], []>} : vector<64x128xbf16>, vector<128x128xbf16>, vector<64x128xf32> -> vector<64x128xf32>
    %cst_4 = arith.constant 0.000000e+00 : f32
    %4 = vector.broadcast %cst_4 : f32 to vector<64x128xf32>
    %5 = arith.maximumf %3, %4 : vector<64x128xf32>
    %6 = arith.truncf %5 : vector<64x128xf32> to vector<64x128xbf16>
    %cst_5 = arith.constant 0.000000e+00 : bf16
    %7 = vector.broadcast %cst_5 : bf16 to vector<1x1x8x128xbf16>
    %c0_6 = arith.constant 0 : index
    %c0_7 = arith.constant 0 : index
    %c0_8 = arith.constant 0 : index
    %c0_9 = arith.constant 0 : index
    %8 = vector.load %arg6[%c0_6, %c0_7, %c0_8, %c0_9] : memref<1x9x8x128xbf16, #tpu.memory_space<vmem>>, vector<1x1x8x128xbf16>
    tpu.vector_store %arg6[%c0_6, %c0_7, %c0_8, %c0_9], %7 {strides = array<i32>} : memref<1x9x8x128xbf16, #tpu.memory_space<vmem>>, vector<1x1x8x128xbf16>,
    %9 = vector.shape_cast %6 : vector<64x128xbf16> to vector<1x8x8x128xbf16>
    %c0_10 = arith.constant 0 : index
    %c1 = arith.constant 1 : index
    %c0_11 = arith.constant 0 : index
    %c0_12 = arith.constant 0 : index
    %10 = vector.load %arg6[%c0_10, %c1, %c0_11, %c0_12] : memref<1x9x8x128xbf16, #tpu.memory_space<vmem>>, vector<1x8x8x128xbf16>
    tpu.vector_store %arg6[%c0_10, %c1, %c0_11, %c0_12], %9 {strides = array<i32>} : memref<1x9x8x128xbf16, #tpu.memory_space<vmem>>, vector<1x8x8x128xbf16>,
    %c0_13 = arith.constant 0 : index
    %c0_14 = arith.constant 0 : index
    %c0_15 = arith.constant 0 : index
    %c0_16 = arith.constant 0 : index
    %11 = vector.load %arg6[%c0_13, %c0_14, %c0_15, %c0_16] : memref<1x9x8x128xbf16, #tpu.memory_space<vmem>>, vector<1x8x8x128xbf16>
    %cst_17 = arith.constant 0.000000e+00 : bf16
    %12 = vector.broadcast %cst_17 : bf16 to vector<1x8x1x128xbf16>
    %13 = vector.extract_strided_slice %11 {offsets = [0, 0, 0, 0], sizes = [1, 8, 7, 128], strides = [1, 1, 1, 1]} : vector<1x8x8x128xbf16> to vector<1x8x7x128xbf16>
    %14 = tpu.concatenate %12, %13 in 2 : vector<1x8x1x128xbf16>, vector<1x8x7x128xbf16> -> vector<1x8x8x128xbf16>
    %c0_18 = arith.constant 0 : index
    %c1_19 = arith.constant 1 : index
    %c0_20 = arith.constant 0 : index
    %c0_21 = arith.constant 0 : index
    %15 = vector.load %arg6[%c0_18, %c1_19, %c0_20, %c0_21] : memref<1x9x8x128xbf16, #tpu.memory_space<vmem>>, vector<1x8x8x128xbf16>
    %cst_22 = arith.constant 0.000000e+00 : bf16
    %16 = vector.broadcast %cst_22 : bf16 to vector<1x8x1x128xbf16>
    %17 = vector.extract_strided_slice %15 {offsets = [0, 0, 0, 0], sizes = [1, 8, 7, 128], strides = [1, 1, 1, 1]} : vector<1x8x8x128xbf16> to vector<1x8x7x128xbf16>
    %18 = tpu.concatenate %16, %17 in 2 : vector<1x8x1x128xbf16>, vector<1x8x7x128xbf16> -> vector<1x8x8x128xbf16>
    %19 = tpu.concatenate %14, %11, %18, %15 in 3 : vector<1x8x8x128xbf16>, vector<1x8x8x128xbf16>, vector<1x8x8x128xbf16>, vector<1x8x8x128xbf16> -> vector<1x8x8x512xbf16>
    %20 = vector.shape_cast %19 : vector<1x8x8x512xbf16> to vector<64x512xbf16>
    %c0_23 = arith.constant 0 : index
    %c0_24 = arith.constant 0 : index
    %21 = vector.load %arg3[%c0_23, %c0_24] : memref<512x256xbf16, #tpu.memory_space<vmem>>, vector<512x256xbf16>
    %cst_25 = arith.constant dense<0.000000e+00> : vector<64x256xf32>
    %22 = tpu.matmul %20, %21, %cst_25 {dimension_numbers = #tpu.dot_dimension_numbers<[1], [0], [0], [1], [0, 0, 1, 1], [], []>} : vector<64x512xbf16>, vector<512x256xbf16>, vector<64x256xf32> -> vector<64x256xf32>
    %c0_26 = arith.constant 0 : index
    %c0_27 = arith.constant 0 : index
    %23 = vector.load %arg4[%c0_26, %c0_27] : memref<1x256xf32, #tpu.memory_space<vmem>>, vector<1x256xf32>
    %24 = vector.broadcast %23 : vector<1x256xf32> to vector<64x256xf32>
    %25 = arith.addf %22, %24 : vector<64x256xf32>
    %cst_28 = arith.constant 0.000000e+00 : f32
    %26 = vector.broadcast %cst_28 : f32 to vector<64x256xf32>
    %27 = arith.maximumf %25, %26 : vector<64x256xf32>
    %28 = vector.shape_cast %27 : vector<64x256xf32> to vector<1x8x8x256xf32>
    %c0_29 = arith.constant 0 : index
    %c0_30 = arith.constant 0 : index
    %c0_31 = arith.constant 0 : index
    %c0_32 = arith.constant 0 : index
    %29 = vector.load %arg5[%c0_29, %c0_30, %c0_31, %c0_32] : memref<1x8x8x256xf32, #tpu.memory_space<vmem>>, vector<1x8x8x256xf32>
    tpu.vector_store %arg5[%c0_29, %c0_30, %c0_31, %c0_32], %28 {strides = array<i32>} : memref<1x8x8x256xf32, #tpu.memory_space<vmem>>, vector<1x8x8x256xf32>,
    return
  }
  func.func @transform_0(%arg0: i32) -> (i32, i32, i32) {
    %c0_i32 = arith.constant 0 : i32
    %c0_i32_0 = arith.constant 0 : i32
    %c0_i32_1 = arith.constant 0 : i32
    return %arg0, %c0_i32, %c0_i32_0 : i32, i32, i32
  }
  func.func @transform_1(%arg0: i32) -> (i32, i32) {
    %c0_i32 = arith.constant 0 : i32
    %c0_i32_0 = arith.constant 0 : i32
    %c0_i32_1 = arith.constant 0 : i32
    return %c0_i32, %c0_i32_0 : i32, i32
  }
  func.func @transform_2(%arg0: i32) -> (i32, i32) {
    %c0_i32 = arith.constant 0 : i32
    %c0_i32_0 = arith.constant 0 : i32
    %c0_i32_1 = arith.constant 0 : i32
    return %c0_i32, %c0_i32_0 : i32, i32
  }
  func.func @transform_3(%arg0: i32) -> (i32, i32) {
    %c0_i32 = arith.constant 0 : i32
    %c0_i32_0 = arith.constant 0 : i32
    %c0_i32_1 = arith.constant 0 : i32
    return %c0_i32, %c0_i32_0 : i32, i32
  }
  func.func @transform_4(%arg0: i32) -> (i32, i32, i32, i32) {
    %c0_i32 = arith.constant 0 : i32
    %c0_i32_0 = arith.constant 0 : i32
    %c0_i32_1 = arith.constant 0 : i32
    %c0_i32_2 = arith.constant 0 : i32
    return %arg0, %c0_i32, %c0_i32_0, %c0_i32_1 : i32, i32, i32, i32
  }
}

</mosaic_0001>

<bundles_post_ra>
// kernel: extra_block_forward.1
= control target key start
LH: loop header
LB: loop body
LE: loop exit
PB: predicated region body
PF: predicated region fallthrough
CT: control target
= control target key end

     0   :  { %9 = vsyncpa [#allocation4], 0  ;;  %s2595_s0 = inlined_call_operand.vmem [shape: bf16[2,64,128], index: 0, kind: input, shape index: {}]   ;;  %s2596_s1 = inlined_call_operand.vmem [shape: bf16[128,128], index: 1, kind: input, shape index: {}]   ;;  %s2597_s2 = inlined_call_operand.vmem [shape: bf16[512,256], index: 2, kind: input, shape index: {}]   ;;  %s2598_s3 = inlined_call_operand.vmem [shape: f32[1,256], index: 3, kind: input, shape index: {}]   ;;  %s2599_s4 = inlined_call_operand.hbm [shape: f32[2,8,8,256], index: 4, kind: output, shape index: {}]  }
   0x1   :  { %11 = vsyncpa [#allocation4 + $0x1], 0  ;;  %s1951_s15 = smov 0   ;;  %s1953_s16 = smov 0  }
   0x2   :  { %s1955_s17 = smov 0   ;;  %s1957_s18 = smov 0  }
   0x3 LB: > { %s1972_s19 = sadd.s32 4294967295, %s1921_s18   ;;  %s1355_s20 = sadd.s32 4294967294, %s1921_s18   ;;  %s1921_s18 = sphi %s1957_s18, %s2607_s18   ;;  %s1917_s17 = sphi %s1955_s17, %s2606_s17   ;;  %s1913_s16 = sphi %s1953_s16, %s2605_s16   ;;  %s1909_s15 = sphi %s1951_s15, %s2604_s15  }
   0x4   : > { %s1976_s21 = sadd.s32 1, %s1921_s18   ;;  %s113_s22 = sadd.s32 1, %s1917_s17 }
   0x5   : > { %s110_s23 = ssub.s32 %s1921_s18, %s1976_s21  ;;  %p123_p0 = scmp.ne.s32.totalorder %s1917_s17, %s1913_s16 }
   0x6   : > { %p111_p1 = scmp.eq.s32.totalorder %s110_s23, 0  ;;  %p124_p2 = scmp.eq.s32.totalorder %s1972_s19, 1 }
   0x7   : > { %p129_p3 = scmp.ne.s32.totalorder %s1913_s16, %s1909_s15  ;;  %p130_p4 = scmp.eq.s32.totalorder %s1355_s20, 1 }
   0x8   : > { %s1987_s24 = scalar_select %p111_p1, %s1917_s17, %s113_s22  }
   0x9   : > { %p1989_p5 = por %p124_p2, %p123_p0  ;;  %p1993_p6 = por %p130_p4, %p129_p3 }
   0xa   : > { %p1358_p7 = scmp.ge.s32.totalorder %s1921_s18, 1  ;;  %p165_p8 = scmp.lt.s32.totalorder %s1921_s18, 3 }
   0xc   : > { %p166_p9 = pnand %p1358_p7, %p165_p8 }
   0xd   : > { %p191_p10 = scmp.lt.s32.totalorder (!%p166_p9), %s1972_s19, 1  ;;  %s188_s8 = sand.u32 (!%p166_p9), 1, %s1913_s16  }
   0xe   : > { %169 = sbr.rel (%p166_p9) target bundleno = 474 (0x1da), region = 36  ;;  %s1359_s9 = sshll.u32 (!%p166_p9), %s188_s8, 7 }
   0xf   : > { %s2526_s10 = scalar_lea.vmem (!%p166_p9), [#allocation3], %s1359_s9  ;;  %s1879_s5 = scalar_lea.hbm (!%p166_p9), %s2599_s4, 256 }
  0x10   : > { %s1290_s20 = sshll.u32 (!%p166_p9), %s2526_s10, 4  ;;  %s1291_s20 = int_to_ptr.vmem [resolvable:$true] %s1290_s20 }
  0x13   : > { %v1683_v0 = vld [vmem:[%s2596_s1 + $0x38] sm:$0xff]  ;;  %v1682_v1 = vld [vmem:[%s2596_s1 + $0x30] sm:$0xff]  ;;  %v1681_v2 = vld [vmem:[%s2596_s1 + $0x28] sm:$0xff]  ;;  %s192_s28 = scalar_select %p191_p10, %s1972_s19, 1  ;;  %v1923_v56 = vmov 0   ;;  %vm444_vm0 = vcmask 1040384  }
  0x14   : > { %293 = vmatpush.bf16.msra.mxu0 %v1683_v0  ;;  %1801 = vmatpush.bf16.msra.mxu1 %v1683_v0  ;;  %v1680_v3 = vld [vmem:[%s2596_s1 + $0x20] sm:$0xff]  ;;  %v1679_v4 = vld [vmem:[%s2596_s1 + $0x18] sm:$0xff]  ;;  %v1532_v5 = vld [vmem:[%s2597_s2 + $0xf0] sm:$0xf]  ;;  %338 = vst [vmem:[#allocation2] sm:$0xf] %v1923_v56 }
  0x15   : > { %v1715_v6 = vld [vmem:[%s2597_s2 + $0xf4] sm:$0xf0]  ;;  %v1524_v7 = vld [vmem:[%s2597_s2 + $0xe0] sm:$0xf]  ;;  %v1678_v8 = vld [vmem:[%s2596_s1 + $0x10] sm:$0xff]  ;;  %s1671_s11 = sshll.u32 %s192_s28, 5 }
  0x16   : > { %v1533_v9 = vor.u32 %v1715_v6, %v1532_v5  ;;  %v1713_v10 = vld [vmem:[%s2597_s2 + $0xe4] sm:$0xf0]  ;;  %v1516_v12 = vld [vmem:[%s2597_s2 + $0xd0] sm:$0xf]  ;;  %v1711_v13 = vld [vmem:[%s2597_s2 + $0xd4] sm:$0xf0]  ;;  %s195_s27 = scalar_lea.vmem %s2595_s0, %s1671_s11 }
  0x17   : > { %v1525_v11 = vor.u32 %v1713_v10, %v1524_v7  ;;  %v1677_v14 = vld [vmem:[%s2596_s1 + $0x8] sm:$0xff]  ;;  %v1517_v15 = vor.u32 %v1711_v13, %v1516_v12  ;;  %v1468_v16 = vld [vmem:[%s2597_s2 + $0x70] sm:$0xf]  ;;  %v1699_v17 = vld [vmem:[%s2597_s2 + $0x74] sm:$0xf0]  ;;  %s1748_s11 = sshll.u32 %s1972_s19, 7 }
  0x18   : > { %294 = vmatpush.bf16.msra.mxu0 %v1682_v1  ;;  %1802 = vmatpush.bf16.msra.mxu1 %v1682_v1  ;;  %v1508_v18 = vld [vmem:[%s2597_s2 + $0xc0] sm:$0xf]  ;;  %v1709_v19 = vld [vmem:[%s2597_s2 + $0xc4] sm:$0xf0]  ;;  %v1469_v21 = vor.u32 %v1699_v17, %v1468_v16  ;;  %v1674_v24 = vld [vmem:[%s195_s27 + $0x10] sm:$0xff]  ;;  %s1289_s14 = scalar_lea.hbm %s2599_s4, %s1748_s11  ;;  %s1278_s19 = scalar_lea.sflag [#allocation4], %s188_s8 }
  0x19   : > { %1042 = vmatpush.bf16.msra.mxu2 %v1533_v9  ;;  %v1676_v20 = vld [vmem:[%s2596_s1] sm:$0xff]  ;;  %v1509_v23 = vor.u32 %v1709_v19, %v1508_v18  ;;  %v1500_v25 = vld [vmem:[%s2597_s2 + $0xb0] sm:$0xf]  ;;  %v1707_v26 = vld [vmem:[%s2597_s2 + $0xb4] sm:$0xf0]  ;;  %s1292_s22 = sshll.u32 %s1289_s14, 4  ;;  %s1293_s22 = int_to_ptr.hbm [resolvable:$true] %s1292_s22 }
  0x1a   : > { %v1672_v22 = vld [vmem:[%s195_s27] sm:$0xff]  ;;  %v1501_v27 = vor.u32 %v1707_v26, %v1500_v25  ;;  %v1673_v28 = vld [vmem:[%s195_s27 + $0x8] sm:$0xff]  ;;  %v1675_v29 = vld [vmem:[%s195_s27 + $0x18] sm:$0xff]  ;;  %vm445_vm1 = vsmask.f32 256  ;;  %s1873_s23 = sshra.s32 %s1293_s22, 4  ;;  %s1874_s23 = int_to_ptr.hbm [resolvable:$true] %s1873_s23 }
  0x1b   : > { %v1660_v30 = vld [vmem:[%s2597_s2 + $0x1f0] sm:$0xf]  ;;  %v1747_v31 = vld [vmem:[%s2597_s2 + $0x1f4] sm:$0xf0]  ;;  %v1652_v33 = vld [vmem:[%s2597_s2 + $0x1e0] sm:$0xf]  ;;  %p1880_p0 = scmp.lt.s32.totalorder %s1874_s23, %s2599_s4 }
  0x1c   : > { %295 = vmatpush.bf16.msra.mxu0 %v1681_v2  ;;  %1803 = vmatpush.bf16.msra.mxu1 %v1681_v2  ;;  %v1661_v32 = vor.u32 %v1747_v31, %v1660_v30  ;;  %v1745_v34 = vld [vmem:[%s2597_s2 + $0x1e4] sm:$0xf0]  ;;  %v1460_v36 = vld [vmem:[%s2597_s2 + $0x60] sm:$0xf]  ;;  %v1644_v41 = vld [vmem:[%s2597_s2 + $0x1d0] sm:$0xf] }
  0x1d   : > { %1043 = vmatpush.bf16.msra.mxu2 %v1525_v11  ;;  %v1653_v35 = vor.u32 %v1745_v34, %v1652_v33  ;;  %v1697_v37 = vld [vmem:[%s2597_s2 + $0x64] sm:$0xf0]  ;;  %v1492_v39 = vld [vmem:[%s2597_s2 + $0xa0] sm:$0xf]  ;;  %v1743_v43 = vld [vmem:[%s2597_s2 + $0x1d4] sm:$0xf0] }
  0x1e   : > { %v1461_v38 = vor.u32 %v1697_v37, %v1460_v36  ;;  %v1705_v40 = vld [vmem:[%s2597_s2 + $0xa4] sm:$0xf0]  ;;  %v1645_v44 = vor.u32 %v1743_v43, %v1644_v41  ;;  %v1452_v45 = vld [vmem:[%s2597_s2 + $0x50] sm:$0xf]  ;;  %v1695_v46 = vld [vmem:[%s2597_s2 + $0x54] sm:$0xf0] }
  0x1f   : > { %v1493_v42 = vor.u32 %v1705_v40, %v1492_v39  ;;  %v1596_v47 = vld [vmem:[%s2597_s2 + $0x170] sm:$0xf]  ;;  %v1453_v48 = vor.u32 %v1695_v46, %v1452_v45  ;;  %v1703_v50 = vld [vmem:[%s2597_s2 + $0x94] sm:$0xf0]  ;;  %v1636_v54 = vld [vmem:[%s2597_s2 + $0x1c0] sm:$0xf] }
  0x20   : > { %296 = vmatpush.bf16.msra.mxu0 %v1680_v3  ;;  %1804 = vmatpush.bf16.msra.mxu1 %v1680_v3  ;;  %v1484_v49 = vld [vmem:[%s2597_s2 + $0x90] sm:$0xf]  ;;  %v1731_v51 = vld [vmem:[%s2597_s2 + $0x174] sm:$0xf0]  ;;  %v1741_v55 = vld [vmem:[%s2597_s2 + $0x1c4] sm:$0xf0] }
  0x21   : > { %1044 = vmatpush.bf16.msra.mxu2 %v1517_v15  ;;  %v1485_v52 = vor.u32 %v1703_v50, %v1484_v49  ;;  %v1597_v53 = vor.u32 %v1731_v51, %v1596_v47  ;;  %v1637_v57 = vor.u32 %v1741_v55, %v1636_v54  ;;  %v1444_v58 = vld [vmem:[%s2597_s2 + $0x40] sm:$0xf]  ;;  %v1693_v59 = vld [vmem:[%s2597_s2 + $0x44] sm:$0xf0]  ;;  %v1628_v2 = vld [vmem:[%s2597_s2 + $0x1b0] sm:$0xf] }
  0x22   : > { %v1445_v60 = vor.u32 %v1693_v59, %v1444_v58  ;;  %v1476_v61 = vld [vmem:[%s2597_s2 + $0x80] sm:$0xf]  ;;  %v1701_v62 = vld [vmem:[%s2597_s2 + $0x84] sm:$0xf0]  ;;  %v1739_v3 = vld [vmem:[%s2597_s2 + $0x1b4] sm:$0xf0] }
  0x23   : > { %1071 = vmatpush.bf16.msra.mxu3 %v1597_v53  ;;  %v1588_v63 = vld [vmem:[%s2597_s2 + $0x160] sm:$0xf]  ;;  %v1477_v0 = vor.u32 %v1701_v62, %v1476_v61  ;;  %v1729_v1 = vld [vmem:[%s2597_s2 + $0x164] sm:$0xf0]  ;;  %v1691_v5 = vld [vmem:[%s2597_s2 + $0x34] sm:$0xf0]  ;;  %v1629_v7 = vor.u32 %v1739_v3, %v1628_v2 }
  0x24   : > { %297 = vmatpush.bf16.msra.mxu0 %v1679_v4  ;;  %1805 = vmatpush.bf16.msra.mxu1 %v1679_v4  ;;  %v1436_v4 = vld [vmem:[%s2597_s2 + $0x30] sm:$0xf]  ;;  %v1589_v6 = vor.u32 %v1729_v1, %v1588_v63  ;;  %v1727_v10 = vld [vmem:[%s2597_s2 + $0x154] sm:$0xf0]  ;;  %v1620_v12 = vld [vmem:[%s2597_s2 + $0x1a0] sm:$0xf] }
  0x25   : > { %1045 = vmatpush.bf16.msra.mxu2 %v1509_v23  ;;  %v1580_v9 = vld [vmem:[%s2597_s2 + $0x150] sm:$0xf]  ;;  %v1737_v13 = vld [vmem:[%s2597_s2 + $0x1a4] sm:$0xf0]  ;;  %v1428_v15 = vld [vmem:[%s2597_s2 + $0x20] sm:$0xf] }
  0x26   : > { %v1581_v11 = vor.u32 %v1727_v10, %v1580_v9  ;;  %v1689_v16 = vld [vmem:[%s2597_s2 + $0x24] sm:$0xf0]  ;;  %v1572_v17 = vld [vmem:[%s2597_s2 + $0x140] sm:$0xf]  ;;  %v1687_v25 = vld [vmem:[%s2597_s2 + $0x14] sm:$0xf0] }
  0x27   : > { %1072 = vmatpush.bf16.msra.mxu3 %v1589_v6  ;;  %v1429_v18 = vor.u32 %v1689_v16, %v1428_v15  ;;  %v1725_v19 = vld [vmem:[%s2597_s2 + $0x144] sm:$0xf0]  ;;  %v1564_v26 = vld [vmem:[%s2597_s2 + $0x130] sm:$0xf]  ;;  %v1412_v33 = vld [vmem:[%s2597_s2] sm:$0xf] }
  0x28   : > { %298 = vmatpush.bf16.msra.mxu0 %v1678_v8  ;;  %1806 = vmatpush.bf16.msra.mxu1 %v1678_v8  ;;  %v1437_v8 = vor.u32 %v1691_v5, %v1436_v4  ;;  %v1733_v30 = vld [vmem:[%s2597_s2 + $0x184] sm:$0xf0]  ;;  %v1556_v36 = vld [vmem:[%s2597_s2 + $0x120] sm:$0xf]  ;;  %v1548_v39 = vld [vmem:[%s2597_s2 + $0x110] sm:$0xf] }
  0x29   : > { %1046 = vmatpush.bf16.msra.mxu2 %v1501_v27  ;;  %v1685_v34 = vld [vmem:[%s2597_s2 + $0x4] sm:$0xf0]  ;;  %v1719_v40 = vld [vmem:[%s2597_s2 + $0x114] sm:$0xf0]  ;;  %v1534_v43 = vld [vmem:[%s2597_s2 + $0xf8] sm:$0xf0] }
  0x2a   : > { %v1721_v37 = vld [vmem:[%s2597_s2 + $0x124] sm:$0xf0]  ;;  %v1549_v41 = vor.u32 %v1719_v40, %v1548_v39  ;;  %v1526_v46 = vld [vmem:[%s2597_s2 + $0xe8] sm:$0xf0]  ;;  %v1540_v47 = vld [vmem:[%s2597_s2 + $0x100] sm:$0xf] }
  0x2b   : > { %1073 = vmatpush.bf16.msra.mxu3 %v1581_v11  ;;  %v1730_v59 = vld [vmem:[%s2597_s2 + $0x174] sm:$0xf]  ;;  %v1598_v63 = vld [vmem:[%s2597_s2 + $0x178] sm:$0xf0]  ;;  %v1728_v6 = vld [vmem:[%s2597_s2 + $0x164] sm:$0xf] }
  0x2c   : > { %299 = vmatpush.bf16.msra.mxu0 %v1677_v14  ;;  %1807 = vmatpush.bf16.msra.mxu1 %v1677_v14  ;;  %v1621_v14 = vor.u32 %v1737_v13, %v1620_v12  ;;  %v1470_v1 = vld [vmem:[%s2597_s2 + $0x78] sm:$0xf0]  ;;  %v1601_v2 = vor.u32 %v1730_v59, %v1598_v63  ;;  %v1710_v4 = vld [vmem:[%s2597_s2 + $0xd4] sm:$0xf]  ;;  %v1590_v11 = vld [vmem:[%s2597_s2 + $0x168] sm:$0xf0] }
  0x2d   : > { %1047 = vmatpush.bf16.msra.mxu2 %v1493_v42  ;;  %v1714_v42 = vld [vmem:[%s2597_s2 + $0xf4] sm:$0xf]  ;;  %v1518_v5 = vld [vmem:[%s2597_s2 + $0xd8] sm:$0xf0]  ;;  %v1696_v12 = vld [vmem:[%s2597_s2 + $0x64] sm:$0xf]  ;;  %v1593_v16 = vor.u32 %v1728_v6, %v1590_v11 }
  0x2e   : > { %v1537_v45 = vor.u32 %v1714_v42, %v1534_v43  ;;  %v1521_v10 = vor.u32 %v1710_v4, %v1518_v5  ;;  %v1462_v13 = vld [vmem:[%s2597_s2 + $0x68] sm:$0xf0]  ;;  %vm2279_vm2 = vmand %vm444_vm0, %vm445_vm1  ;;  %v1746_v63 = vld [vmem:[%s2597_s2 + $0x1f4] sm:$0xf]  ;;  %s1875_s29 = scalar_lea.hbm %s1874_s23, 128 }
  0x2f   : > { %p1876_p11 = scmp.ne.s32.totalorder %s1874_s23, %s1875_s29  ;;  %p1881_p1 = scmp.lt.s32.totalorder %s1879_s5, %s1875_s29 }
  0x30   : > { %300 = vmatpush.bf16.msra.mxu0 %v1676_v20  ;;  %1808 = vmatpush.bf16.msra.mxu1 %v1676_v20  ;;  %v1612_v20 = vld [vmem:[%s2597_s2 + $0x190] sm:$0xf] }
  0x31   : > { %1048 = vmatpush.bf16.msra.mxu2 %v1485_v52  ;;  %p1877_p12 = pnand %p1876_p11, %p1989_p5  ;;  %p1882_p2 = por %p1881_p1, %p1880_p0 }
  0x33   : > { %301 = vmatmul.bf16.vlgmr.msra.gmra.mxu0 %v1672_v22  ;;  %311 = vmatmul.bf16.vlgmr.msra.gmra.mxu1 %v1674_v24  ;;  %v1573_v22 = vor.u32 %v1725_v19, %v1572_v17  ;;  %v1420_v24 = vld [vmem:[%s2597_s2 + $0x10] sm:$0xf]  ;;  %v1465_v17 = vor.u32 %v1696_v12, %v1462_v13  ;;  %v1510_v19 = vld [vmem:[%s2597_s2 + $0xc8] sm:$0xf0]  ;;  %v1706_v13 = vld [vmem:[%s2597_s2 + $0xb4] sm:$0xf]  ;;  %p1878_p13 = pneg %p1877_p12 }
  0x34   : > { %1013 = vmatpush.bf16.msrb.mxu1 %v1469_v21  ;;  %1100 = vmatpush.bf16.msrb.mxu0 %v1661_v32  ;;  %v1735_v21 = vld [vmem:[%s2597_s2 + $0x194] sm:$0xf0]  ;;  %v1421_v27 = vor.u32 %v1687_v25, %v1420_v24 }
  0x35   : > { %1049 = vmatpush.bf16.msra.mxu2 %v1477_v0  ;;  %v1613_v23 = vor.u32 %v1735_v21, %v1612_v20  ;;  %1074 = vmatpush.bf16.msra.mxu3 %v1573_v22  ;;  %v1698_v0 = vld [vmem:[%s2597_s2 + $0x74] sm:$0xf]  ;;  %p1883_p3 = pnand %p1882_p2, %p1878_p13 }
  0x36   : > { %v1473_v3 = vor.u32 %v1698_v0, %v1470_v1 }
  0x38   : > { %1101 = vmatpush.bf16.msrb.mxu0 %v1653_v35  ;;  %1014 = vmatpush.bf16.msrb.mxu1 %v1461_v38  ;;  %v1413_v35 = vor.u32 %v1685_v34, %v1412_v33  ;;  %v1557_v38 = vor.u32 %v1721_v37, %v1556_v36 }
  0x39   : > { %1158 = vmatpush.bf16.msrb.mxu2 %v1537_v45 }
  0x3c   : > { %1102 = vmatpush.bf16.msrb.mxu0 %v1645_v44  ;;  %1015 = vmatpush.bf16.msrb.mxu1 %v1453_v48  ;;  %v1712_v44 = vld [vmem:[%s2597_s2 + $0xe4] sm:$0xf]  ;;  %v1717_v48 = vld [vmem:[%s2597_s2 + $0x104] sm:$0xf0] }
  0x3d   : > { %v1541_v51 = vor.u32 %v1717_v48, %v1540_v47  ;;  %v1529_v53 = vor.u32 %v1712_v44, %v1526_v46 }
  0x3f   : > { %1159 = vmatpush.bf16.msrb.mxu2 %v1529_v53 }
  0x40   : > { %1103 = vmatpush.bf16.msrb.mxu0 %v1637_v57  ;;  %1016 = vmatpush.bf16.msrb.mxu1 %v1445_v60 }
  0x43   : > { %306 = vmatmul.bf16.gmra.mxu0 %v1673_v28  ;;  %316 = vmatmul.bf16.gmra.mxu1 %v1675_v29  ;;  %v1723_v28 = vld [vmem:[%s2597_s2 + $0x134] sm:$0xf0]  ;;  %v1604_v29 = vld [vmem:[%s2597_s2 + $0x180] sm:$0xf] }
  0x44   : > { %1104 = vmatpush.bf16.msrb.mxu0 %v1629_v7  ;;  %1017 = vmatpush.bf16.msrb.mxu1 %v1437_v8  ;;  %v1565_v31 = vor.u32 %v1723_v28, %v1564_v26  ;;  %v1605_v32 = vor.u32 %v1733_v30, %v1604_v29 }
  0x45   : > { %1160 = vmatpush.bf16.msrb.mxu2 %v1521_v10 }
  0x46   : > { %1075 = vmatpush.bf16.msra.mxu3 %v1565_v31 }
  0x48   : > { %1105 = vmatpush.bf16.msrb.mxu0 %v1621_v14  ;;  %1018 = vmatpush.bf16.msrb.mxu1 %v1429_v18  ;;  %v1708_v18 = vld [vmem:[%s2597_s2 + $0xc4] sm:$0xf] }
  0x49   : > { %v1513_v31 = vor.u32 %v1708_v18, %v1510_v19  ;;  %v1704_v19 = vld [vmem:[%s2597_s2 + $0xa4] sm:$0xf] }
  0x4a   : > { %1076 = vmatpush.bf16.msra.mxu3 %v1557_v38 }
  0x4b   : > { %1161 = vmatpush.bf16.msrb.mxu2 %v1513_v31  ;;  %v1702_v31 = vld [vmem:[%s2597_s2 + $0x94] sm:$0xf] }
  0x4c   : > { %1106 = vmatpush.bf16.msrb.mxu0 %v1613_v23  ;;  %1019 = vmatpush.bf16.msrb.mxu1 %v1421_v27 }
  0x4e   : > { %1077 = vmatpush.bf16.msra.mxu3 %v1549_v41 }
  0x50   : > { %1107 = vmatpush.bf16.msrb.mxu0 %v1605_v32  ;;  %1020 = vmatpush.bf16.msrb.mxu1 %v1413_v35 }
  0x52   : > { %1078 = vmatpush.bf16.msra.mxu3 %v1541_v51 }
  0x54   : > { %1129 = vmatpush.bf16.msra.mxu1 %v1473_v3  ;;  %v1582_v3 = vld [vmem:[%s2597_s2 + $0x158] sm:$0xf0] }
  0x56   : > { %1187 = vmatpush.bf16.msrb.mxu3 %v1601_v2  ;;  %v1726_v2 = vld [vmem:[%s2597_s2 + $0x154] sm:$0xf] }
  0x57   : > { %v1585_v6 = vor.u32 %v1726_v2, %v1582_v3  ;;  %v1722_v2 = vld [vmem:[%s2597_s2 + $0x134] sm:$0xf]  ;;  %v1566_v3 = vld [vmem:[%s2597_s2 + $0x138] sm:$0xf0] }
  0x58   : > { %1130 = vmatpush.bf16.msra.mxu1 %v1465_v17 }
  0x5a   : > { %1188 = vmatpush.bf16.msrb.mxu3 %v1593_v16 }
  0x5e   : > { %1189 = vmatpush.bf16.msrb.mxu3 %v1585_v6  ;;  %v1569_v6 = vor.u32 %v1722_v2, %v1566_v3  ;;  %v1716_v3 = vld [vmem:[%s2597_s2 + $0x104] sm:$0xf] }
  0xb0   : > { %v302_v49 = vpop.f32.mrf.mxu0  ;;  %v2232_v50 = vpop.f32.mrf.mxu1 }
  0xb1   : > { %v322_v52 = vmax.f32 %v302_v49, 0.0  ;;  %v326_v40 = vmax.f32 %v2232_v50, 0.0 }
  0xb3   : > { %v330_v54 = vpack.c.bf16 %v322_v52, %v322_v52 }
  0xb5   : > { %340 = vst [vmem:[#allocation2 + $0x4] sm:$0xf] %v330_v54 }
  0xb8   : > { %v304_v55 = vpop.f32.mrf.mxu0  ;;  %v314_v56 = vpop.f32.mrf.mxu1 }
  0xb9   : > { %v323_v20 = vmax.f32 %v304_v55, 0.0  ;;  %v327_v23 = vmax.f32 %v314_v56, 0.0 }
  0xbc   : > { %v2234_v57 = vld [vmem:[#allocation2] sm:$0xff]  }
  0xbd   : > { %v455_v58 = vld [vmem:[#allocation2 + $0x4] sm:$0xf]  ;;  %v1766_v60 = vunpack.c.l.b16 %v2234_v57  ;;  %v1767_v61 = vunpack.c.h.b16 %v2234_v57  ;;  %1050 = vmatmul.bf16.vlgmr.msra.gmra.mxu2 %v2234_v57 }
  0xbe   : > { %v471_v62 = vunpack.c.l.b16 %v455_v58 }
  0xbf   : > { %v372_v7 = vpack.c.b16 %v1766_v60, %v1766_v60  ;;  %v373_v8 = vpack.c.b16 %v1767_v61, %v1767_v61 }
  0xc0   : > { %v479_v9 = vpack.c.b16 %v471_v62, %v471_v62  ;;  %v307_v14 = vpop.f32.mrf.mxu0  ;;  %v317_v15 = vpop.f32.mrf.mxu1 }
  0xc1   : > { %v381_v21 = vshrl.u32 %v372_v7, 16  ;;  %v388_v22 = vshrl.u32 %v373_v8, 16  ;;  %v384_v24 = vshll.u32 %v372_v7, 16  ;;  %v324_v25 = vmax.f32 %v307_v14, 0.0  ;;  %v1694_v7 = vld [vmem:[%s2597_s2 + $0x54] sm:$0xf] }
  0xc2   : > { %v328_v26 = vmax.f32 %v317_v15, 0.0  ;;  %v488_v27 = vshrl.u32 %v479_v9, 16  ;;  %v391_v28 = vshll.u32 %v373_v8, 16  ;;  %v491_v43 = vshll.u32 %v479_v9, 16  ;;  %v1454_v8 = vld [vmem:[%s2597_s2 + $0x58] sm:$0xf0] }
  0xc3   : > { %v383_v29 = vrot.slane %v381_v21, 7  ;;  %v390_v30 = vrot.slane %v388_v22, 7  ;;  %v2275_v32 = vpack.c.bf16 %v324_v25, %v323_v20  ;;  %v1457_v12 = vor.u32 %v1694_v7, %v1454_v8  ;;  %v1502_v14 = vld [vmem:[%s2597_s2 + $0xb8] sm:$0xf0]  ;;  %v1494_v20 = vld [vmem:[%s2597_s2 + $0xa8] sm:$0xf0] }
  0xc4   : > { %v2283_v34 = vpack.c.bf16 %v328_v26, %v327_v23  ;;  %v490_v37 = vrot.slane %v488_v27, 7  ;;  %v1505_v17 = vor.u32 %v1706_v13, %v1502_v14  ;;  %v1574_v25 = vld [vmem:[%s2597_s2 + $0x148] sm:$0xf0]  ;;  %v1692_v27 = vld [vmem:[%s2597_s2 + $0x44] sm:$0xf] }
  0xc5   : > { %v386_v35 = vor.u32 %v384_v24, %v383_v29  ;;  %v393_v36 = vor.u32 %v391_v28, %v390_v30  ;;  %v1770_v38 = vunpack.c.l.b16 %v2275_v32  ;;  %v2287_v39 = vunpack.c.h.b16 %v2275_v32  ;;  %1131 = vmatpush.bf16.msra.mxu1 %v1457_v12  ;;  %v1724_v24 = vld [vmem:[%s2597_s2 + $0x144] sm:$0xf]  ;;  %v1446_v28 = vld [vmem:[%s2597_s2 + $0x48] sm:$0xf0]  ;;  %v1690_v7 = vld [vmem:[%s2597_s2 + $0x34] sm:$0xf] }
  0xc6   : > { %v493_v50 = vor.u32 %v491_v43, %v490_v37  ;;  %1162 = vmatpush.bf16.msrb.mxu2 %v1505_v17  ;;  %v1438_v8 = vld [vmem:[%s2597_s2 + $0x38] sm:$0xf0]  ;;  %v1688_v12 = vld [vmem:[%s2597_s2 + $0x24] sm:$0xf]  ;;  %v1430_v13 = vld [vmem:[%s2597_s2 + $0x28] sm:$0xf0] }
  0xc7   : > { %v447_v41 = vsel %vm2279_vm2, 0, %v386_v35  ;;  %v448_v42 = vsel %vm2279_vm2, 0, %v393_v36  ;;  %v374_v47 = vpack.c.b16 %v1770_v38, %v1770_v38  ;;  %v375_v48 = vpack.c.b16 %v2287_v39, %v2287_v39  ;;  %v1486_v35 = vld [vmem:[%s2597_s2 + $0x98] sm:$0xf0]  ;;  %v1744_v36 = vld [vmem:[%s2597_s2 + $0x1e4] sm:$0xf] }
  0xc8   : > { %v309_v44 = vpop.f32.mrf.mxu0  ;;  %v575_v45 = vunpack.c.l.b16 %v447_v41  ;;  %v577_v46 = vunpack.c.l.b16 %v448_v42  ;;  %v319_v49 = vpop.f32.mrf.mxu1  ;;  %v2296_v53 = vpack.c.b16 %v1770_v38, %v471_v62  ;;  %v1662_v62 = vld [vmem:[%s2597_s2 + $0x1f8] sm:$0xf0]  ;;  %v551_v4 = vsel %vm2279_vm2, 0, %v493_v50  ;;  %v1654_v41 = vld [vmem:[%s2597_s2 + $0x1e8] sm:$0xf0] }
  0xc9   : > { %v325_v51 = vmax.f32 %v309_v44, 0.0  ;;  %v329_v52 = vmax.f32 %v319_v49, 0.0  ;;  %v395_v55 = vshrl.u32 %v374_v47, 16  ;;  %v402_v56 = vshrl.u32 %v375_v48, 16  ;;  %v1742_v44 = vld [vmem:[%s2597_s2 + $0x1d4] sm:$0xf] }
  0xca   : > { %v2298_v54 = vpack.c.b16 %v577_v46, %v575_v45  ;;  %1108 = vmatmul.bf16.vlgmr.msrb.gmra.mxu0 %v2296_v53  ;;  %v398_v60 = vshll.u32 %v374_v47, 16  ;;  %v405_v61 = vshll.u32 %v375_v48, 16  ;;  %v2326_v9 = vor.u32 %v1746_v63, %v1662_v62  ;;  %v1646_v45 = vld [vmem:[%s2597_s2 + $0x1d8] sm:$0xf0]  ;;  %v1478_v50 = vld [vmem:[%s2597_s2 + $0x88] sm:$0xf0] }
  0xcb   : > { %v2300_v58 = vpack.c.bf16 %v326_v40, %v325_v51  ;;  %v337_v59 = vpack.c.bf16 %v329_v52, %v329_v52  ;;  %v397_v0 = vrot.slane %v395_v55, 7  ;;  %v404_v1 = vrot.slane %v402_v56, 7  ;;  %v1700_v52 = vld [vmem:[%s2597_s2 + $0x84] sm:$0xf]  ;;  %v1638_v62 = vld [vmem:[%s2597_s2 + $0x1c8] sm:$0xf0] }
  0xcc   : > { %1021 = vmatmul.bf16.vlgmr.msrb.gmra.mxu1 %v2298_v54  ;;  %1216 = vmatpush.bf16.msra.mxu0 %v2326_v9  ;;  %v576_v22 = vunpack.c.l.b16 %v551_v4  ;;  %v1497_v38 = vor.u32 %v1704_v19, %v1494_v20  ;;  %v1577_v40 = vor.u32 %v1724_v24, %v1574_v25  ;;  %v1449_v42 = vor.u32 %v1692_v27, %v1446_v28  ;;  %v1740_v63 = vld [vmem:[%s2597_s2 + $0x1c4] sm:$0xf]  ;;  %v1630_v19 = vld [vmem:[%s2597_s2 + $0x1b8] sm:$0xf0]  ;;  %v1686_v24 = vld [vmem:[%s2597_s2 + $0x14] sm:$0xf] }
  0xcd   : > { %1055 = vmatmul.bf16.gmra.mxu2 %v2275_v32  ;;  %v1774_v5 = vunpack.c.l.b16 %v2300_v58  ;;  %347 = vst [vmem:[#allocation2 + $0x20] sm:$0xf] %v337_v59  ;;  %v400_v10 = vor.u32 %v398_v60, %v397_v0  ;;  %v407_v11 = vor.u32 %v405_v61, %v404_v1  ;;  %v2335_v15 = vunpack.c.h.b16 %v2300_v58  ;;  %v1622_v27 = vld [vmem:[%s2597_s2 + $0x1a8] sm:$0xf0] }
  0xce   : > { %v1657_v43 = vor.u32 %v1744_v36, %v1654_v41  ;;  %1163 = vmatpush.bf16.msrb.mxu2 %v1497_v38  ;;  %1190 = vmatpush.bf16.msrb.mxu3 %v1577_v40  ;;  %v1489_v48 = vor.u32 %v1702_v31, %v1486_v35  ;;  %v2384_v51 = vunpack.c.l.b16 %v2283_v34  ;;  %v1649_v56 = vor.u32 %v1742_v44, %v1646_v45  ;;  %v1734_v41 = vld [vmem:[%s2597_s2 + $0x194] sm:$0xf]  ;;  %v1414_v45 = vld [vmem:[%s2597_s2 + $0x8] sm:$0xf0] }
  0xcf   : > { %v376_v16 = vpack.c.b16 %v1774_v5, %v1774_v5  ;;  %v449_v18 = vsel %vm2279_vm2, 0, %v400_v10  ;;  %v450_v26 = vsel %vm2279_vm2, 0, %v407_v11  ;;  %v377_v30 = vpack.c.b16 %v2335_v15, %v2335_v15  ;;  %1132 = vmatpush.bf16.msra.mxu1 %v1449_v42  ;;  %v1614_v42 = vld [vmem:[%s2597_s2 + $0x198] sm:$0xf0] }
  0xd0   : > { %v579_v21 = vunpack.c.l.b16 %v449_v18  ;;  %v581_v46 = vunpack.c.l.b16 %v450_v26  ;;  %1217 = vmatpush.bf16.msra.mxu0 %v1657_v43  ;;  %v2393_v59 = vpack.c.b16 %v1774_v5, %v2287_v39  ;;  %v1481_v61 = vor.u32 %v1700_v52, %v1478_v50  ;;  %v1738_v18 = vld [vmem:[%s2597_s2 + $0x1b4] sm:$0xf]  ;;  %v1736_v26 = vld [vmem:[%s2597_s2 + $0x1a4] sm:$0xf] }
  0xd1   : > { %v509_v23 = vshrl.u32 %v376_v16, 16  ;;  %v512_v47 = vshll.u32 %v376_v16, 16  ;;  %v416_v49 = vshrl.u32 %v377_v30, 16  ;;  %v378_v1 = vpack.c.b16 %v2384_v51, %v2384_v51 }
  0xd2   : > { %v2360_v29 = vpack.c.b16 %v579_v21, %v576_v22  ;;  %v2395_v60 = vpack.c.b16 %v581_v46, %v579_v21  ;;  %1164 = vmatpush.bf16.msrb.mxu2 %v1489_v48  ;;  %v1641_v4 = vor.u32 %v1740_v63, %v1638_v62  ;;  %v419_v5 = vshll.u32 %v377_v30, 16  ;;  %1191 = vmatpush.bf16.msrb.mxu3 %v1569_v6  ;;  %v1720_v22 = vld [vmem:[%s2597_s2 + $0x124] sm:$0xf] }
  0xd3   : > { %v511_v37 = vrot.slane %v509_v23, 7  ;;  %v418_v0 = vrot.slane %v416_v49, 7  ;;  %v2423_v10 = vunpack.c.h.b16 %v2283_v34  ;;  %v1441_v11 = vor.u32 %v1690_v7, %v1438_v8  ;;  %v1558_v23 = vld [vmem:[%s2597_s2 + $0x128] sm:$0xf0]  ;;  %v1732_v62 = vld [vmem:[%s2597_s2 + $0x184] sm:$0xf] }
  0xd4   : > { %1079 = vmatmul.bf16.vlgmr.msra.gmra.mxu3 %v2360_v29  ;;  %1218 = vmatpush.bf16.msra.mxu0 %v1649_v56  ;;  %v523_v17 = vshrl.u32 %v378_v1, 16  ;;  %v1433_v20 = vor.u32 %v1688_v12, %v1430_v13  ;;  %v1633_v21 = vor.u32 %v1738_v18, %v1630_v19  ;;  %v1561_v25 = vor.u32 %v1720_v22, %v1558_v23  ;;  %v462_v40 = vld [vmem:[#allocation2 + $0x20] sm:$0xf] }
  0xd5   : > { %v514_v55 = vor.u32 %v512_v47, %v511_v37  ;;  %v421_v14 = vor.u32 %v419_v5, %v418_v0  ;;  %1133 = vmatpush.bf16.msra.mxu1 %v1441_v11  ;;  %v379_v31 = vpack.c.b16 %v2423_v10, %v2423_v10  ;;  %v526_v35 = vshll.u32 %v378_v1, 16 }
  0xd6   : > { %1165 = vmatpush.bf16.msrb.mxu2 %v1481_v61  ;;  %1192 = vmatpush.bf16.msrb.mxu3 %v1561_v25  ;;  %v525_v36 = vrot.slane %v523_v17, 7  ;;  %v1625_v38 = vor.u32 %v1736_v26, %v1622_v27  ;;  %v478_v48 = vunpack.c.l.b16 %v462_v40  ;;  %v1617_v49 = vor.u32 %v1734_v41, %v1614_v42 }
  0xd7   : > { %v554_v39 = vsel %vm2279_vm2, 0, %v514_v55  ;;  %v452_v28 = vsel %vm2279_vm2, 0, %v421_v14  ;;  %v672_v52 = vpack.c.b16 %v2384_v51, %v2335_v15  ;;  %v433_v63 = vshll.u32 %v379_v31, 16  ;;  %v1718_v15 = vld [vmem:[%s2597_s2 + $0x114] sm:$0xf] }
  0xd8   : > { %v582_v16 = vunpack.c.l.b16 %v554_v39  ;;  %1219 = vmatpush.bf16.msra.mxu0 %v1641_v4  ;;  %v585_v44 = vunpack.c.l.b16 %v452_v28  ;;  %v528_v47 = vor.u32 %v526_v35, %v525_v36  ;;  %v486_v1 = vpack.c.b16 %v478_v48, %v478_v48  ;;  %v1550_v51 = vld [vmem:[%s2597_s2 + $0x118] sm:$0xf0] }
  0xd9   : > { %1134 = vmatpush.bf16.msra.mxu1 %v1433_v20  ;;  %v1553_v2 = vor.u32 %v1718_v15, %v1550_v51  ;;  %v676_v18 = vpack.c.b16 %v478_v48, %v2423_v10 }
  0xda   : > { %1113 = vmatmul.bf16.gmra.mxu0 %v2393_v59  ;;  %1809 = vmatpush.bf16.msra.mxu2 %v2326_v9  ;;  %v1422_v9 = vld [vmem:[%s2597_s2 + $0x18] sm:$0xf0]  ;;  %v2458_v30 = vpack.c.b16 %v582_v16, %v581_v46  ;;  %v430_v46 = vshrl.u32 %v379_v31, 16  ;;  %v669_v55 = vpack.c.b16 %v585_v44, %v582_v16  ;;  %v556_v0 = vsel %vm2279_vm2, 0, %v528_v47 }
  0xdb   : > { %v1425_v37 = vor.u32 %v1686_v24, %v1422_v9  ;;  %v586_v6 = vunpack.c.l.b16 %v556_v0  ;;  %1193 = vmatpush.bf16.msrb.mxu3 %v1553_v2  ;;  %v537_v8 = vshrl.u32 %v486_v1, 16  ;;  %v540_v13 = vshll.u32 %v486_v1, 16 }
  0xdc   : > { %1026 = vmatmul.bf16.gmra.mxu1 %v2395_v60  ;;  %1220 = vmatpush.bf16.msra.mxu0 %v1633_v21  ;;  %v432_v61 = vrot.slane %v430_v46, 7 }
  0xdd   : > { %1060 = vmatmul.bf16.gmra.mxu2 %v2300_v58  ;;  %1135 = vmatpush.bf16.msra.mxu1 %v1425_v37  ;;  %v671_v12 = vpack.c.b16 %v586_v6, %v585_v44  ;;  %v539_v14 = vrot.slane %v537_v8, 7 }
  0xde   : > { %1810 = vmatpush.bf16.msra.mxu2 %v1657_v43  ;;  %v1684_v43 = vld [vmem:[%s2597_s2 + $0x4] sm:$0xf]  ;;  %v435_v5 = vor.u32 %v433_v63, %v432_v61 }
  0xdf   : > { %v1417_v50 = vor.u32 %v1684_v43, %v1414_v45  ;;  %v542_v17 = vor.u32 %v540_v13, %v539_v14 }
  0xe0   : > { %1221 = vmatpush.bf16.msra.mxu0 %v1625_v38  ;;  %v454_v11 = vsel %vm2279_vm2, 0, %v435_v5 }
  0xe1   : > { %1136 = vmatpush.bf16.msra.mxu1 %v1417_v50  ;;  %v589_v16 = vunpack.c.l.b16 %v454_v11  ;;  %v558_v20 = vsel %vm2279_vm2, 0, %v542_v17 }
  0xe2   : > { %1811 = vmatpush.bf16.msra.mxu2 %v1649_v56  ;;  %v1606_v56 = vld [vmem:[%s2597_s2 + $0x188] sm:$0xf0] }
  0xe3   : > { %v1609_v39 = vor.u32 %v1732_v62, %v1606_v56  ;;  %v673_v19 = vpack.c.b16 %v589_v16, %v586_v6 }
  0xe4   : > { %1084 = vmatmul.bf16.gmra.mxu3 %v2458_v30  ;;  %1222 = vmatpush.bf16.msra.mxu0 %v1617_v49 }
  0xe6   : > { %1812 = vmatpush.bf16.msra.mxu2 %v1641_v4  ;;  %v1542_v4 = vld [vmem:[%s2597_s2 + $0x108] sm:$0xf0] }
  0xe7   : > { %v1545_v7 = vor.u32 %v1716_v3, %v1542_v4 }
  0xe8   : > { %1223 = vmatpush.bf16.msra.mxu0 %v1609_v39 }
  0xe9   : > { %1194 = vmatpush.bf16.msrb.mxu3 %v1545_v7 }
  0xea   : > { %1118 = vmatmul.bf16.gmra.mxu0 %v672_v52  ;;  %1813 = vmatpush.bf16.msra.mxu2 %v1633_v21  ;;  %v590_v21 = vunpack.c.l.b16 %v558_v20 }
  0xec   : > { %1031 = vmatmul.bf16.gmra.mxu1 %v669_v55  ;;  %v675_v22 = vpack.c.b16 %v590_v21, %v589_v16 }
  0xed   : > { %1065 = vmatmul.bf16.gmra.mxu2 %v2283_v34 }
  0xee   : > { %1814 = vmatpush.bf16.msra.mxu2 %v1625_v38 }
  0xf2   : > { %1815 = vmatpush.bf16.msra.mxu2 %v1617_v49 }
  0xf4   : > { %1089 = vmatmul.bf16.gmra.mxu3 %v671_v12 }
  0xf6   : > { %1816 = vmatpush.bf16.msra.mxu2 %v1609_v39 }
  0xfa   : > { %1123 = vmatmul.bf16.gmra.mxu0 %v676_v18 }
  0xfc   : > { %1036 = vmatmul.bf16.gmra.mxu1 %v673_v19 }
  0xfd   : > { %1166 = vmatmul.bf16.vlgmr.msrb.gmra.mxu2 %v2234_v57 }
 0x104   : > { %1094 = vmatmul.bf16.gmra.mxu3 %v675_v22 }
 0x10a   : > { %1224 = vmatmul.bf16.vlgmr.msra.gmra.mxu0 %v2296_v53 }
 0x10c   : > { %1137 = vmatmul.bf16.vlgmr.msra.gmra.mxu1 %v2298_v54  ;;  %v2516_v54 = vld [vmem:[%s2598_s3] sm:$0x3] }
 0x10d   : > { %1171 = vmatmul.bf16.gmra.mxu2 %v2275_v32 }
 0x114   : > { %1195 = vmatmul.bf16.vlgmr.msrb.gmra.mxu3 %v2360_v29 }
 0x11a   : > { %1229 = vmatmul.bf16.gmra.mxu0 %v2393_v59 }
 0x11c   : > { %1142 = vmatmul.bf16.gmra.mxu1 %v2395_v60 }
 0x11d   : > { %1176 = vmatmul.bf16.gmra.mxu2 %v2300_v58  ;;  %v2519_v58 = vperm.slane %v2516_v54, 0 }
 0x124   : > { %1200 = vmatmul.bf16.gmra.mxu3 %v2458_v30 }
 0x12a   : > { %1234 = vmatmul.bf16.gmra.mxu0 %v672_v52 }
 0x12c   : > { %1147 = vmatmul.bf16.gmra.mxu1 %v669_v55 }
 0x12d   : > { %1181 = vmatmul.bf16.gmra.mxu2 %v2283_v34 }
 0x134   : > { %1205 = vmatmul.bf16.gmra.mxu3 %v671_v12 }
 0x13c   : > { %1152 = vmatmul.bf16.gmra.mxu1 %v673_v19 }
 0x13d   : > { %1239 = vmatmul.bf16.vlgmr.msra.gmra.mxu2 %v676_v18 }
 0x140   : > { %v1051_v57 = vpop.f32.mrf.mxu2 }
 0x144   : > { %1210 = vmatmul.bf16.gmra.mxu3 %v675_v22 }
 0x147   : > { %v1109_v33 = vpop.f32.mrf.mxu0 }
 0x148   : > { %v1053_v32 = vpop.f32.mrf.mxu2 }
 0x149   : > { %v1022_v53 = vpop.f32.mrf.mxu1 }
 0x14a   : > { %v1023_v60 = vadd.f32 %v1022_v53, %v2519_v58 }
 0x14c   : > { %v1052_v24 = vadd.f32 %v1051_v57, %v1023_v60 }
 0x14f   : > { %v1111_v59 = vpop.f32.mrf.mxu0 }
 0x150   : > { %v1056_v29 = vpop.f32.mrf.mxu2 }
 0x151   : > { %v1024_v34 = vpop.f32.mrf.mxu1 }
 0x152   : > { %v1025_v27 = vadd.f32 %v1024_v34, %v2519_v58 }
 0x154   : > { %v1054_v36 = vadd.f32 %v1053_v32, %v1025_v27 }
 0x157   : > { %v1114_v23 = vpop.f32.mrf.mxu0  ;;  %v1080_v9 = vpop.f32.mrf.mxu3 }
 0x158   : > { %v1058_v10 = vpop.f32.mrf.mxu2  ;;  %v1081_v26 = vadd.f32 %v1080_v9, %v1052_v24 }
 0x159   : > { %v1027_v25 = vpop.f32.mrf.mxu1 }
 0x15a   : > { %v1110_v28 = vadd.f32 %v1109_v33, %v1081_v26  ;;  %v1028_v41 = vadd.f32 %v1027_v25, %v2519_v58 }
 0x15c   : > { %v1245_v30 = vmax.f32 %v1110_v28, 0.0  ;;  %v1057_v46 = vadd.f32 %v1056_v29, %v1028_v41 }
 0x15e   : > { %1261 = vst [vmem:[%s2526_s10] sm:$0xff] %v1245_v30 }
 0x15f   : > { %v1116_v35 = vpop.f32.mrf.mxu0  ;;  %v1082_v38 = vpop.f32.mrf.mxu3 }
 0x160   : > { %v1061_v31 = vpop.f32.mrf.mxu2  ;;  %v1083_v40 = vadd.f32 %v1082_v38, %v1054_v36 }
 0x161   : > { %v1029_v37 = vpop.f32.mrf.mxu1 }
 0x162   : > { %v1112_v42 = vadd.f32 %v1111_v59, %v1083_v40  ;;  %v1030_v52 = vadd.f32 %v1029_v37, %v2519_v58 }
 0x164   : > { %v1247_v44 = vmax.f32 %v1112_v42, 0.0  ;;  %v1059_v63 = vadd.f32 %v1058_v10, %v1030_v52  ;;  %v2541_v10 = vperm.slane %v2516_v54, 1 }
 0x166   : > { %1263 = vst [vmem:[%s2526_s10 + $0x10] sm:$0xff] %v1247_v44 }
 0x167   : > { %v1119_v45 = vpop.f32.mrf.mxu0  ;;  %v1085_v48 = vpop.f32.mrf.mxu3 }
 0x168   : > { %v1063_v43 = vpop.f32.mrf.mxu2  ;;  %v1086_v49 = vadd.f32 %v1085_v48, %v1057_v46 }
 0x169   : > { %v1032_v47 = vpop.f32.mrf.mxu1 }
 0x16a   : > { %v1115_v50 = vadd.f32 %v1114_v23, %v1086_v49  ;;  %v1033_v15 = vadd.f32 %v1032_v47, %v2519_v58 }
 0x16c   : > { %v1249_v55 = vmax.f32 %v1115_v50, 0.0  ;;  %v1062_v3 = vadd.f32 %v1061_v31, %v1033_v15 }
 0x16e   : > { %1265 = vst [vmem:[%s2526_s10 + $0x20] sm:$0xff] %v1249_v55 }
 0x16f   : > { %v1087_v56 = vpop.f32.mrf.mxu3  ;;  %v1121_v0 = vpop.f32.mrf.mxu0 }
 0x170   : > { %v1066_v61 = vpop.f32.mrf.mxu2  ;;  %v1088_v1 = vadd.f32 %v1087_v56, %v1059_v63 }
 0x171   : > { %v1034_v62 = vpop.f32.mrf.mxu1 }
 0x172   : > { %v1117_v51 = vadd.f32 %v1116_v35, %v1088_v1  ;;  %v1035_v7 = vadd.f32 %v1034_v62, %v2519_v58 }
 0x174   : > { %v1251_v39 = vmax.f32 %v1117_v51, 0.0  ;;  %v1064_v14 = vadd.f32 %v1063_v43, %v1035_v7 }
 0x176   : > { %1267 = vst [vmem:[%s2526_s10 + $0x30] sm:$0xff] %v1251_v39 }
 0x177   : > { %v1090_v5 = vpop.f32.mrf.mxu3  ;;  %v1124_v8 = vpop.f32.mrf.mxu0 }
 0x178   : > { %v1068_v2 = vpop.f32.mrf.mxu2  ;;  %v1091_v6 = vadd.f32 %v1090_v5, %v1062_v3 }
 0x179   : > { %v1037_v4 = vpop.f32.mrf.mxu1 }
 0x17a   : > { %v1120_v11 = vadd.f32 %v1119_v45, %v1091_v6  ;;  %v1038_v19 = vadd.f32 %v1037_v4, %v2519_v58 }
 0x17c   : > { %v1253_v12 = vmax.f32 %v1120_v11, 0.0  ;;  %v1067_v32 = vadd.f32 %v1066_v61, %v1038_v19 }
 0x17e   : > { %1269 = vst [vmem:[%s2526_s10 + $0x40] sm:$0xff] %v1253_v12 }
 0x17f   : > { %v1092_v17 = vpop.f32.mrf.mxu3  ;;  %v1126_v21 = vpop.f32.mrf.mxu0 }
 0x180   : > { %v1167_v13 = vpop.f32.mrf.mxu2  ;;  %v1093_v18 = vadd.f32 %v1092_v17, %v1064_v14 }
 0x181   : > { %v1039_v16 = vpop.f32.mrf.mxu1 }
 0x182   : > { %v1122_v20 = vadd.f32 %v1121_v0, %v1093_v18  ;;  %v1040_v59 = vadd.f32 %v1039_v16, %v2519_v58 }
 0x184   : > { %v1255_v22 = vmax.f32 %v1122_v20, 0.0  ;;  %v1069_v25 = vadd.f32 %v1068_v2, %v1040_v59 }
 0x186   : > { %1271 = vst [vmem:[%s2526_s10 + $0x50] sm:$0xff] %v1255_v22 }
 0x187   : > { %v1095_v53 = vpop.f32.mrf.mxu3  ;;  %v1225_v23 = vpop.f32.mrf.mxu0 }
 0x188   : > { %v1169_v57 = vpop.f32.mrf.mxu2  ;;  %v1096_v29 = vadd.f32 %v1095_v53, %v1067_v32 }
 0x189   : > { %v1138_v33 = vpop.f32.mrf.mxu1 }
 0x18a   : > { %v1125_v34 = vadd.f32 %v1124_v8, %v1096_v29  ;;  %v1139_v28 = vadd.f32 %v1138_v33, %v2541_v10 }
 0x18c   : > { %v1257_v60 = vmax.f32 %v1125_v34, 0.0  ;;  %v1168_v58 = vadd.f32 %v1167_v13, %v1139_v28 }
 0x18e   : > { %1273 = vst [vmem:[%s2526_s10 + $0x60] sm:$0xff] %v1257_v60 }
 0x18f   : > { %v1097_v26 = vpop.f32.mrf.mxu3  ;;  %v1227_v38 = vpop.f32.mrf.mxu0 }
 0x190   : > { %v1172_v24 = vpop.f32.mrf.mxu2  ;;  %v1098_v27 = vadd.f32 %v1097_v26, %v1069_v25 }
 0x191   : > { %v1140_v9 = vpop.f32.mrf.mxu1 }
 0x192   : > { %v1127_v30 = vadd.f32 %v1126_v21, %v1098_v27  ;;  %v1141_v40 = vadd.f32 %v1140_v9, %v2541_v10 }
 0x194   : > { %v1259_v31 = vmax.f32 %v1127_v30, 0.0  ;;  %v1170_v43 = vadd.f32 %v1169_v57, %v1141_v40 }
 0x196   : > { %1275 = vst [vmem:[%s2526_s10 + $0x70] sm:$0xff] %v1259_v31 }
 0x197   : > { %v1196_v37 = vpop.f32.mrf.mxu3  ;;  %v1230_v52 = vpop.f32.mrf.mxu0 }
 0x198   : > { %v1174_v35 = vpop.f32.mrf.mxu2  ;;  %v1197_v54 = vadd.f32 %v1196_v37, %v1168_v58 }
 0x199   : > { %v1143_v36 = vpop.f32.mrf.mxu1 }
 0x19a   : > { %v1226_v41 = vadd.f32 %v1225_v23, %v1197_v54  ;;  %v1144_v48 = vadd.f32 %v1143_v36, %v2541_v10 }
 0x19c   : > { %v1246_v42 = vmax.f32 %v1226_v41, 0.0  ;;  %v1173_v55 = vadd.f32 %v1172_v24, %v1144_v48 }
 0x19e   : > { %1262 = vst [vmem:[%s2526_s10 + $0x8] sm:$0xff] %v1246_v42 }
 0x19f   : > { %v1198_v46 = vpop.f32.mrf.mxu3  ;;  %v1232_v51 = vpop.f32.mrf.mxu0 }
 0x1a0   : > { %v1177_v44 = vpop.f32.mrf.mxu2  ;;  %v1199_v47 = vadd.f32 %v1198_v46, %v1170_v43 }
 0x1a1   : > { %v1145_v45 = vpop.f32.mrf.mxu1 }
 0x1a2   : > { %v1228_v49 = vadd.f32 %v1227_v38, %v1199_v47  ;;  %v1146_v0 = vadd.f32 %v1145_v45, %v2541_v10 }
 0x1a4   : > { %v1248_v50 = vmax.f32 %v1228_v49, 0.0  ;;  %v1175_v39 = vadd.f32 %v1174_v35, %v1146_v0 }
 0x1a6   : > { %1264 = vst [vmem:[%s2526_s10 + $0x18] sm:$0xff] %v1248_v50 }
 0x1a7   : > { %v1201_v61 = vpop.f32.mrf.mxu3  ;;  %v1235_v12 = vpop.f32.mrf.mxu0 }
 0x1a8   : > { %v1179_v63 = vpop.f32.mrf.mxu2  ;;  %v1202_v62 = vadd.f32 %v1201_v61, %v1173_v55 }
 0x1a9   : > { %v1148_v56 = vpop.f32.mrf.mxu1 }
 0x1aa   : > { %v1231_v1 = vadd.f32 %v1230_v52, %v1202_v62  ;;  %v1149_v4 = vadd.f32 %v1148_v56, %v2541_v10 }
 0x1ac   : > { %v1250_v15 = vmax.f32 %v1231_v1, 0.0  ;;  %v1178_v11 = vadd.f32 %v1177_v44, %v1149_v4 }
 0x1ae   : > { %1266 = vst [vmem:[%s2526_s10 + $0x28] sm:$0xff] %v1250_v15 }
 0x1af   : > { %v1203_v2 = vpop.f32.mrf.mxu3  ;;  %v1237_v32 = vpop.f32.mrf.mxu0 }
 0x1b0   : > { %v1204_v3 = vadd.f32 %v1203_v2, %v1175_v39  ;;  %v1182_v5 = vpop.f32.mrf.mxu2 }
 0x1b1   : > { %v1150_v7 = vpop.f32.mrf.mxu1 }
 0x1b2   : > { %v1233_v6 = vadd.f32 %v1232_v51, %v1204_v3  ;;  %v1151_v16 = vadd.f32 %v1150_v7, %v2541_v10 }
 0x1b4   : > { %v1252_v8 = vmax.f32 %v1233_v6, 0.0  ;;  %v1180_v21 = vadd.f32 %v1179_v63, %v1151_v16 }
 0x1b6   : > { %1268 = vst [vmem:[%s2526_s10 + $0x38] sm:$0xff] %v1252_v8 }
 0x1b7   : > { %v1206_v13 = vpop.f32.mrf.mxu3 }
 0x1b8   : > { %v1207_v14 = vadd.f32 %v1206_v13, %v1178_v11  ;;  %v1184_v18 = vpop.f32.mrf.mxu2 }
 0x1b9   : > { %v1153_v20 = vpop.f32.mrf.mxu1 }
 0x1ba   : > { %v1236_v17 = vadd.f32 %v1235_v12, %v1207_v14  ;;  %v1154_v33 = vadd.f32 %v1153_v20, %v2541_v10 }
 0x1bc   : > { %v1254_v19 = vmax.f32 %v1236_v17, 0.0  ;;  %v1183_v34 = vadd.f32 %v1182_v5, %v1154_v33 }
 0x1be   : > { %1270 = vst [vmem:[%s2526_s10 + $0x48] sm:$0xff] %v1254_v19 }
 0x1bf   : > { %v1208_v22 = vpop.f32.mrf.mxu3 }
 0x1c0   : > { %v1209_v57 = vadd.f32 %v1208_v22, %v1180_v21  ;;  %v1240_v59 = vpop.f32.mrf.mxu2 }
 0x1c1   : > { %v1155_v60 = vpop.f32.mrf.mxu1 }
 0x1c2   : > { %v1238_v53 = vadd.f32 %v1237_v32, %v1209_v57  ;;  %v1156_v25 = vadd.f32 %v1155_v60, %v2541_v10 }
 0x1c4   : > { %v1256_v29 = vmax.f32 %v1238_v53, 0.0  ;;  %v1185_v27 = vadd.f32 %v1184_v18, %v1156_v25 }
 0x1c6   : > { %1272 = vst [vmem:[%s2526_s10 + $0x58] sm:$0xff] %v1256_v29 }
 0x1c7   : > { %v1211_v23 = vpop.f32.mrf.mxu3 }
 0x1c8   : > { %v1212_v24 = vadd.f32 %v1211_v23, %v1183_v34  ;;  %v1242_v31 = vpop.f32.mrf.mxu2 }
 0x1ca   : > { %v1241_v9 = vadd.f32 %v1240_v59, %v1212_v24 }
 0x1cc   : > { %v1258_v26 = vmax.f32 %v1241_v9, 0.0 }
 0x1ce   : > { %1274 = vst [vmem:[%s2526_s10 + $0x68] sm:$0xff] %v1258_v26 }
 0x1cf   : > { %v1213_v28 = vpop.f32.mrf.mxu3 }
 0x1d0   : > { %v1214_v30 = vadd.f32 %v1213_v28, %v1185_v27 }
 0x1d2   : > { %v1243_v35 = vadd.f32 %v1242_v31, %v1214_v30 }
 0x1d4   : > { %v1260_v10 = vmax.f32 %v1243_v35, 0.0 }
 0x1d6   : > { %1276 = vst [vmem:[%s2526_s10 + $0x78] sm:$0xff] %v1260_v10 }
 0x1d7   : > { %1886 = shalt.err (!%p1883_p3)
}
 0x1d8   : > { %s1924_s7 = smov 256   ;;  %s1925_s8 = smov 16  }
 0x1d9   : > { %1817 = dma.vmem_to_hbm [thread:$0]  (%p1989_p5), %s1291_s20, 2048, %s1293_s22, %s1278_s19, %s1924_s7, %s1924_s7, %s1925_s8  }
 0x1da PF: > { %p1823_p4 = scmp.ge.s32.totalorder %s1921_s18, 2  ;;  %s1307_s9 = sand.u32 1, %s1909_s15  }
 0x1db   : > { %s1308_s10 = scalar_lea.sflag [#allocation4], %s1307_s9 }
 0x1dc   : > { %p1820_p7 = pnand %p1823_p4, %p1993_p6 }
 0x1de   : > { %p1821_p8 = pneg %p1820_p7 }
 0x1e0   : > { %1904 = dma.done.wait (%p1821_p8), %s1308_s10, 2048  }
 0x1e1   : > { %1906 = vsyncadd (%p1821_p8), %s1308_s10, 4294965248  ;;  %p14_p9 = scmp.ge.s32.totalorder %s1976_s21, 4   ;;  %s2604_s15 = smov %s1913_s16 }
 0x1e2   : > { %s2605_s16 = smov %s1917_s17  ;;  %s2606_s17 = smov %s1987_s24 }
 0x1e3   : > { %s2607_s18 = smov %s1976_s21  ;;  %16 = sbr.rel (!%p14_p9) target bundleno = 3 (0x3), region = 72 }
 0x1e8   :  { %1314 = vsyncpa [#allocation4], 1 }
 0x1e9   :  { %1316 = vsyncpa [#allocation4 + $0x1], 1 }

</bundles_post_ra>
